<compile_context>
chip_gen: v7x
topology: tpu7x:2x2x1
jax: 0.10.0
libtpu: 0.0.40
codegen_flags: <defaults>
</compile_context>

<pallas_src>
import functools

import jax
import jax.numpy as jnp
from jax import lax
from jax.experimental import pallas as pl
from jax.experimental.pallas import tpu as pltpu

EPS = 1e-5          # nn.InstanceNorm2d default eps
NEG_SLOPE = 0.2     # nn.LeakyReLU(0.2)


def _round_up(x, m):
    return (x + m - 1) // m * m


def _vmem_capacity_bytes():
    try:
        return int(pltpu.get_tpu_info().vmem_capacity_bytes)
    except Exception:
        return 64 * 1024 * 1024     # conservative default (v7x per-core VMEM)


_VMEM_CAP = _vmem_capacity_bytes()


def _probe_single_buffer_support():
    """Compile a trivial kernel with pipeline_mode=pl.Buffered(1) to see if the
    installed JAX/Mosaic honours single-buffered BlockSpecs on this path."""
    try:
        def k(x_ref, o_ref):
            o_ref[...] = x_ref[...] * 2.0

        f = pl.pallas_call(
            k,
            out_shape=jax.ShapeDtypeStruct((8, 128), jnp.float32),
            grid=(1,),
            in_specs=[pl.BlockSpec((8, 128), lambda i: (0, 0),
                                   pipeline_mode=pl.Buffered(1))],
            out_specs=pl.BlockSpec((8, 128), lambda i: (0, 0)),
        )
        jax.jit(f).lower(jax.ShapeDtypeStruct((8, 128), jnp.float32)).compile()
        return True
    except Exception:
        return False


_SINGLE_BUFFER_OK = _probe_single_buffer_support()


def _make_kernel(KH, Wr, Pp, inv_n, n_pad):
    def kernel(x_ref, w_ref, g_ref, b_ref, o_ref):
        # x_ref: (1, Rp, KW*Cin) bf16  row-flattened, width-folded, reflect-padded image
        # w_ref: (KH, KW*Cin, Ct) bf16 per-kh weight matrices for this channel tile
        # g_ref/b_ref: (1, Ct) f32     InstanceNorm affine params (channel tile)
        # o_ref: (1, Pp, Ct)           fused conv+IN+LeakyReLU output

        # Conv = KH sublane-aligned shifted matmuls with K = KW*Cin, accumulated
        # as values (no scratch read-modify-write), bf16 MXU with f32 accumulate.
        acc = jnp.dot(x_ref[0, 0:Pp, :], w_ref[0],
                      preferred_element_type=jnp.float32)
        for kh in range(1, KH):
            off = kh * Wr            # Wr % 16 == 0  ->  aligned bf16 slice
            acc = acc + jnp.dot(x_ref[0, off:off + Pp, :], w_ref[kh],
                                preferred_element_type=jnp.float32)

        # Width-padded columns of the folded input are exactly zero, so acc is
        # exactly zero on those rows.  Two-pass instance-norm statistics with a
        # closed-form correction for the n_pad all-zero rows (no mask input, no
        # in-kernel iota/mod needed).
        mean = jnp.sum(acc, axis=0, keepdims=True) * inv_n          # (1, Ct)
        d = acc - mean
        var = (jnp.sum(d * d, axis=0, keepdims=True)
               - n_pad * (mean * mean)) * inv_n
        var = jnp.maximum(var, 0.0)

        # Fused normalize + affine + LeakyReLU, single elementwise pass.
        scale = g_ref[...] * lax.rsqrt(var + EPS)
        shift = b_ref[...] - mean * scale
        y = acc * scale + shift
        o_ref[0] = jnp.where(y > 0.0, y, NEG_SLOPE * y).astype(o_ref.dtype)

    return kernel


@functools.partial(jax.jit, static_argnames=("stride",))
def disc_block(x_nchw, w_oihw, gamma, beta, *, stride=1):
    """Forward of discBlock (default config: batch_norm=True, kernel_size=4, padding=1)."""
    # TODO(synk): stride=2 variant and the batch_norm=False (conv-bias, no IN) branch.
    assert stride == 1
    N, Cin, H, W = x_nchw.shape
    Cout, Cin_w, KH, KW = w_oihw.shape
    assert Cin_w == Cin
    Hp, Wp = H + 2, W + 2                   # reflect padding=1 on each side
    Ho, Wo = Hp - KH + 1, Wp - KW + 1       # = H-1, W-1 for k=4, s=1
    assert Ho > 0 and Wo > 0

    KWC = KW * Cin
    Wr = _round_up(Wo, 16)                  # sublane-aligned row stride (bf16 packs 16 rows)
    Pp = Ho * Wr                            # output rows (multiple of 16)
    Rp = Hp * Wr                            # input rows; max access = (Pp-1)+(KH-1)*Wr = Rp-1

    Coutp = _round_up(Cout, 128)            # lane-dense outputs / full MXU N dim
    Ct = 256 if Coutp % 256 == 0 else 128   # channel tile (256 fills the v6e/v7x MXU width)
    nCt = Coutp // Ct

    # ---- glue: NCHW -> NHWC, reflect pad, fold KW taps into channels, flatten rows ----
    x = jnp.transpose(x_nchw, (0, 2, 3, 1))
    x = jnp.pad(x, ((0, 0), (1, 1), (1, 1), (0, 0)), mode="reflect")     # (N,Hp,Wp,Cin)
    x = jnp.concatenate([x[:, :, kw:kw + Wo, :] for kw in range(KW)],
                        axis=-1)                                         # (N,Hp,Wo,KW*Cin)
    x = jnp.pad(x, ((0, 0), (0, 0), (0, Wr - Wo), (0, 0)))               # zero width pad
    x = x.reshape(N, Rp, KWC).astype(jnp.bfloat16)

    # Conv weight (Cout,Cin,KH,KW) -> (KH, KW*Cin, Coutp), matching the kw-major fold.
    w_taps = jnp.transpose(w_oihw, (2, 3, 1, 0)).reshape(KH, KWC, Cout)
    w_taps = jnp.pad(w_taps, ((0, 0), (0, 0), (0, Coutp - Cout))).astype(jnp.bfloat16)

    gamma_p = jnp.pad(gamma.astype(jnp.float32).reshape(1, Cout),
                      ((0, 0), (0, Coutp - Cout)))
    beta_p = jnp.pad(beta.astype(jnp.float32).reshape(1, Cout),
                     ((0, 0), (0, Coutp - Cout)))

    kernel = _make_kernel(KH, Wr, Pp,
                          inv_n=1.0 / float(Ho * Wo),
                          n_pad=float(Ho * (Wr - Wo)))

    # Single-buffer the grid-invariant operands when there is one channel tile.
    const_kwargs = {}
    single_buffer = _SINGLE_BUFFER_OK and nCt == 1
    if single_buffer:
        const_kwargs = dict(pipeline_mode=pl.Buffered(1))

    out_dtype = x_nchw.dtype
    out_itemsize = jnp.dtype(out_dtype).itemsize

    # ---- generation-aware VMEM budget (tile-rounded footprint estimate) ----
    kwc_l = _round_up(KWC, 128)             # lane padding of the bf16 input block
    w_bufs = 1 if single_buffer else 2
    vmem_est = (2 * Rp * kwc_l * 2                        # input block, double-buffered
                + w_bufs * KH * _round_up(KWC, 16) * Ct * 2   # weights
                + w_bufs * 2 * 8 * Ct * 4                 # gamma/beta (sublane-padded)
                + 2 * Pp * Ct * out_itemsize              # output block, double-buffered
                + 4 * Pp * Ct * 4                         # acc / dot / norm temporaries
                + 2 * Pp * kwc_l * 2)                     # shifted-slice temporaries
    vmem_limit = int(min(max(2 * vmem_est, 32 * 1024 * 1024),
                         _VMEM_CAP - 4 * 1024 * 1024))
    vmem_limit = max(vmem_limit, 16 * 1024 * 1024)
    # TODO(synk): when vmem_est exceeds the per-core budget (large H*W on v7x's
    # 64 MiB), add a spatial row-block grid axis with halo + two-phase stats.

    out = pl.pallas_call(
        kernel,
        out_shape=jax.ShapeDtypeStruct((N, Pp, Coutp), out_dtype),
        grid_spec=pltpu.PrefetchScalarGridSpec(
            num_scalar_prefetch=0,
            grid=(N, nCt),
            in_specs=[
                pl.BlockSpec((1, Rp, KWC), lambda n, c: (n, 0, 0)),
                pl.BlockSpec((KH, KWC, Ct), lambda n, c: (0, 0, c), **const_kwargs),
                pl.BlockSpec((1, Ct), lambda n, c: (0, c), **const_kwargs),
                pl.BlockSpec((1, Ct), lambda n, c: (0, c), **const_kwargs),
            ],
            out_specs=pl.BlockSpec((1, Pp, Ct), lambda n, c: (n, 0, c)),
        ),
        compiler_params=pltpu.CompilerParams(
            dimension_semantics=("parallel", "parallel"),
            vmem_limit_bytes=vmem_limit,
        ),
    )(x, w_taps, gamma_p, beta_p)

    # glue: drop width/channel padding, back to NCHW like the PyTorch module.
    out = out[:, :, :Cout].reshape(N, Ho, Wr, Cout)[:, :, :Wo, :]
    return jnp.transpose(out, (0, 3, 1, 2))


def _reference(x_nchw, w_oihw, gamma, beta):
    """Pure-JAX f32 reference of discBlock's forward (validation only)."""
    xp = jnp.pad(x_nchw, ((0, 0), (0, 0), (1, 1), (1, 1)), mode="reflect")
    y = lax.conv_general_dilated(
        xp, w_oihw, window_strides=(1, 1), padding="VALID",
        dimension_numbers=("NCHW", "OIHW", "NCHW"))
    mean = jnp.mean(y, axis=(2, 3), keepdims=True)
    var = jnp.mean((y - mean) ** 2, axis=(2, 3), keepdims=True)
    y = (y - mean) * lax.rsqrt(var + EPS)
    y = y * gamma.reshape(1, -1, 1, 1) + beta.reshape(1, -1, 1, 1)
    return jnp.where(y > 0, y, NEG_SLOPE * y)


if __name__ == "__main__":
    # Small shapes consistent with the module: N=2, Cin=4, Cout=8, H=W=16, k=4 -> 15x15 out.
    N, Cin, Cout, H, W, KH, KW = 2, 4, 8, 16, 16, 4, 4

    key = jax.random.PRNGKey(0)
    kx, kw, kg, kb = jax.random.split(key, 4)
    x = jax.random.normal(kx, (N, Cin, H, W), dtype=jnp.float32)
    w = 0.05 * jax.random.normal(kw, (Cout, Cin, KH, KW), dtype=jnp.float32)   # Conv2d weight (bias=False)
    gamma = 1.0 + 0.1 * jax.random.normal(kg, (Cout,), dtype=jnp.float32)      # InstanceNorm2d affine weight
    beta = 0.1 * jax.random.normal(kb, (Cout,), dtype=jnp.float32)             # InstanceNorm2d affine bias

    out = jax.block_until_ready(disc_block(x, w, gamma, beta))
    ref = jax.block_until_ready(_reference(x, w, gamma, beta))

    assert out.shape == (N, Cout, H - 1, W - 1), out.shape
    err = float(jnp.max(jnp.abs(out - ref)))
    assert err < 5e-2, err

    print("KERNEL_OK")
</pallas_src>

<mosaic_0001>
module attributes {stable_mosaic.version = 11 : i64} {
  func.func @kernel(%arg0: i32, %arg1: i32, %arg2: memref<1x288x16xbf16, #tpu.memory_space<vmem>>, %arg3: memref<4x16x128xbf16, #tpu.memory_space<vmem>>, %arg4: memref<1x128xf32, #tpu.memory_space<vmem>>, %arg5: memref<1x128xf32, #tpu.memory_space<vmem>>, %arg6: memref<1x240x128xf32, #tpu.memory_space<vmem>>) attributes {dimension_semantics = [#tpu.dimension_semantics<parallel>, #tpu.dimension_semantics<parallel>], iteration_bounds = array<i64: 2, 1>, scalar_prefetch = 0 : i64, scratch_operands = 0 : i64, tpu.core_type = #tpu.core_type<tc>, window_params = [{transform_indices = @transform_0, window_bounds = array<i64: 1, 288, 16>}, {transform_indices = @transform_1, window_bounds = array<i64: 4, 16, 128>}, {transform_indices = @transform_2, window_bounds = array<i64: 1, 128>}, {transform_indices = @transform_3, window_bounds = array<i64: 1, 128>}, {transform_indices = @transform_4, window_bounds = array<i64: 1, 240, 128>}]} {
    %c0 = arith.constant 0 : index
    %c0_0 = arith.constant 0 : index
    %c0_1 = arith.constant 0 : index
    %0 = vector.load %arg2[%c0, %c0_0, %c0_1] : memref<1x288x16xbf16, #tpu.memory_space<vmem>>, vector<1x240x16xbf16>
    %1 = vector.shape_cast %0 : vector<1x240x16xbf16> to vector<240x16xbf16>
    %c0_2 = arith.constant 0 : index
    %c0_3 = arith.constant 0 : index
    %c0_4 = arith.constant 0 : index
    %2 = vector.load %arg3[%c0_2, %c0_3, %c0_4] : memref<4x16x128xbf16, #tpu.memory_space<vmem>>, vector<1x16x128xbf16>
    %3 = vector.shape_cast %2 : vector<1x16x128xbf16> to vector<16x128xbf16>
    %cst = arith.constant dense<0.000000e+00> : vector<240x128xf32>
    %4 = tpu.matmul %1, %3, %cst {dimension_numbers = #tpu.dot_dimension_numbers<[1], [0], [0], [1], [0, 0, 1, 1], [], []>} : vector<240x16xbf16>, vector<16x128xbf16>, vector<240x128xf32> -> vector<240x128xf32>
    %c0_5 = arith.constant 0 : index
    %c16 = arith.constant 16 : index
    %c0_6 = arith.constant 0 : index
    %5 = vector.load %arg2[%c0_5, %c16, %c0_6] : memref<1x288x16xbf16, #tpu.memory_space<vmem>>, vector<1x240x16xbf16>
    %6 = vector.shape_cast %5 : vector<1x240x16xbf16> to vector<240x16xbf16>
    %c1 = arith.constant 1 : index
    %c0_7 = arith.constant 0 : index
    %c0_8 = arith.constant 0 : index
    %7 = vector.load %arg3[%c1, %c0_7, %c0_8] : memref<4x16x128xbf16, #tpu.memory_space<vmem>>, vector<1x16x128xbf16>
    %8 = vector.shape_cast %7 : vector<1x16x128xbf16> to vector<16x128xbf16>
    %cst_9 = arith.constant dense<0.000000e+00> : vector<240x128xf32>
    %9 = tpu.matmul %6, %8, %cst_9 {dimension_numbers = #tpu.dot_dimension_numbers<[1], [0], [0], [1], [0, 0, 1, 1], [], []>} : vector<240x16xbf16>, vector<16x128xbf16>, vector<240x128xf32> -> vector<240x128xf32>
    %10 = arith.addf %4, %9 : vector<240x128xf32>
    %c0_10 = arith.constant 0 : index
    %c32 = arith.constant 32 : index
    %c0_11 = arith.constant 0 : index
    %11 = vector.load %arg2[%c0_10, %c32, %c0_11] : memref<1x288x16xbf16, #tpu.memory_space<vmem>>, vector<1x240x16xbf16>
    %12 = vector.shape_cast %11 : vector<1x240x16xbf16> to vector<240x16xbf16>
    %c2 = arith.constant 2 : index
    %c0_12 = arith.constant 0 : index
    %c0_13 = arith.constant 0 : index
    %13 = vector.load %arg3[%c2, %c0_12, %c0_13] : memref<4x16x128xbf16, #tpu.memory_space<vmem>>, vector<1x16x128xbf16>
    %14 = vector.shape_cast %13 : vector<1x16x128xbf16> to vector<16x128xbf16>
    %cst_14 = arith.constant dense<0.000000e+00> : vector<240x128xf32>
    %15 = tpu.matmul %12, %14, %cst_14 {dimension_numbers = #tpu.dot_dimension_numbers<[1], [0], [0], [1], [0, 0, 1, 1], [], []>} : vector<240x16xbf16>, vector<16x128xbf16>, vector<240x128xf32> -> vector<240x128xf32>
    %16 = arith.addf %10, %15 : vector<240x128xf32>
    %c0_15 = arith.constant 0 : index
    %c48 = arith.constant 48 : index
    %c0_16 = arith.constant 0 : index
    %17 = vector.load %arg2[%c0_15, %c48, %c0_16] : memref<1x288x16xbf16, #tpu.memory_space<vmem>>, vector<1x240x16xbf16>
    %18 = vector.shape_cast %17 : vector<1x240x16xbf16> to vector<240x16xbf16>
    %c3 = arith.constant 3 : index
    %c0_17 = arith.constant 0 : index
    %c0_18 = arith.constant 0 : index
    %19 = vector.load %arg3[%c3, %c0_17, %c0_18] : memref<4x16x128xbf16, #tpu.memory_space<vmem>>, vector<1x16x128xbf16>
    %20 = vector.shape_cast %19 : vector<1x16x128xbf16> to vector<16x128xbf16>
    %cst_19 = arith.constant dense<0.000000e+00> : vector<240x128xf32>
    %21 = tpu.matmul %18, %20, %cst_19 {dimension_numbers = #tpu.dot_dimension_numbers<[1], [0], [0], [1], [0, 0, 1, 1], [], []>} : vector<240x16xbf16>, vector<16x128xbf16>, vector<240x128xf32> -> vector<240x128xf32>
    %22 = arith.addf %16, %21 : vector<240x128xf32>
    %cst_20 = arith.constant dense<0.000000e+00> : vector<128xf32>
    %23 = vector.multi_reduction <add>, %22, %cst_20 [0] : vector<240x128xf32> to vector<128xf32>
    %24 = vector.shape_cast %23 : vector<128xf32> to vector<1x128xf32>
    %cst_21 = arith.constant 0.00444444455 : f32
    %25 = vector.broadcast %cst_21 : f32 to vector<1x128xf32>
    %26 = arith.mulf %24, %25 : vector<1x128xf32>
    %27 = vector.broadcast %26 : vector<1x128xf32> to vector<240x128xf32>
    %28 = arith.subf %22, %27 : vector<240x128xf32>
    %29 = arith.mulf %28, %28 : vector<240x128xf32>
    %cst_22 = arith.constant dense<0.000000e+00> : vector<128xf32>
    %30 = vector.multi_reduction <add>, %29, %cst_22 [0] : vector<240x128xf32> to vector<128xf32>
    %31 = vector.shape_cast %30 : vector<128xf32> to vector<1x128xf32>
    %32 = arith.mulf %26, %26 : vector<1x128xf32>
    %cst_23 = arith.constant 1.500000e+01 : f32
    %33 = vector.broadcast %cst_23 : f32 to vector<1x128xf32>
    %34 = arith.mulf %33, %32 : vector<1x128xf32>
    %35 = arith.subf %31, %34 : vector<1x128xf32>
    %cst_24 = arith.constant 0.00444444455 : f32
    %36 = vector.broadcast %cst_24 : f32 to vector<1x128xf32>
    %37 = arith.mulf %35, %36 : vector<1x128xf32>
    %cst_25 = arith.constant 0.000000e+00 : f32
    %38 = vector.broadcast %cst_25 : f32 to vector<1x128xf32>
    %39 = arith.maximumf %37, %38 : vector<1x128xf32>
    %c0_26 = arith.constant 0 : index
    %c0_27 = arith.constant 0 : index
    %40 = vector.load %arg4[%c0_26, %c0_27] : memref<1x128xf32, #tpu.memory_space<vmem>>, vector<1x128xf32>
    %cst_28 = arith.constant 9.99999974E-6 : f32
    %41 = vector.broadcast %cst_28 : f32 to vector<1x128xf32>
    %42 = arith.addf %39, %41 : vector<1x128xf32>
    %43 = math.rsqrt %42 : vector<1x128xf32>
    %44 = arith.mulf %40, %43 : vector<1x128xf32>
    %c0_29 = arith.constant 0 : index
    %c0_30 = arith.constant 0 : index
    %45 = vector.load %arg5[%c0_29, %c0_30] : memref<1x128xf32, #tpu.memory_space<vmem>>, vector<1x128xf32>
    %46 = arith.mulf %26, %44 : vector<1x128xf32>
    %47 = arith.subf %45, %46 : vector<1x128xf32>
    %48 = vector.broadcast %44 : vector<1x128xf32> to vector<240x128xf32>
    %49 = arith.mulf %22, %48 : vector<240x128xf32>
    %50 = vector.broadcast %47 : vector<1x128xf32> to vector<240x128xf32>
    %51 = arith.addf %49, %50 : vector<240x128xf32>
    %cst_31 = arith.constant 0.000000e+00 : f32
    %52 = vector.broadcast %cst_31 : f32 to vector<240x128xf32>
    %53 = arith.cmpf ogt, %51, %52 : vector<240x128xf32>
    %cst_32 = arith.constant 2.000000e-01 : f32
    %54 = vector.broadcast %cst_32 : f32 to vector<240x128xf32>
    %55 = arith.mulf %54, %51 : vector<240x128xf32>
    %56 = arith.select %53, %51, %55 : vector<240x128xi1>, vector<240x128xf32>
    %c0_33 = arith.constant 0 : index
    %c0_34 = arith.constant 0 : index
    %c0_35 = arith.constant 0 : index
    %57 = vector.load %arg6[%c0_33, %c0_34, %c0_35] : memref<1x240x128xf32, #tpu.memory_space<vmem>>, vector<1x240x128xf32>
    %58 = vector.shape_cast %57 : vector<1x240x128xf32> to vector<240x128xf32>
    %59 = vector.shape_cast %56 : vector<240x128xf32> to vector<1x240x128xf32>
    tpu.vector_store %arg6[%c0_33, %c0_34, %c0_35], %59 {strides = array<i32>} : memref<1x240x128xf32, #tpu.memory_space<vmem>>, vector<1x240x128xf32>,
    return
  }
  func.func @transform_0(%arg0: i32, %arg1: i32) -> (i32, i32, i32) {
    %c0_i32 = arith.constant 0 : i32
    %c0_i32_0 = arith.constant 0 : i32
    %c0_i32_1 = arith.constant 0 : i32
    return %arg0, %c0_i32, %c0_i32_0 : i32, i32, i32
  }
  func.func @transform_1(%arg0: i32, %arg1: i32) -> (i32, i32, i32) {
    %c0_i32 = arith.constant 0 : i32
    %c0_i32_0 = arith.constant 0 : i32
    %c0_i32_1 = arith.constant 0 : i32
    return %c0_i32, %c0_i32_0, %arg1 : i32, i32, i32
  }
  func.func @transform_2(%arg0: i32, %arg1: i32) -> (i32, i32) {
    %c0_i32 = arith.constant 0 : i32
    %c0_i32_0 = arith.constant 0 : i32
    return %c0_i32, %arg1 : i32, i32
  }
  func.func @transform_3(%arg0: i32, %arg1: i32) -> (i32, i32) {
    %c0_i32 = arith.constant 0 : i32
    %c0_i32_0 = arith.constant 0 : i32
    return %c0_i32, %arg1 : i32, i32
  }
  func.func @transform_4(%arg0: i32, %arg1: i32) -> (i32, i32, i32) {
    %c0_i32 = arith.constant 0 : i32
    %c0_i32_0 = arith.constant 0 : i32
    return %arg0, %c0_i32, %arg1 : i32, i32, i32
  }
}

</mosaic_0001>

<bundles_post_ra>
// kernel: disc_block.1
= control target key start
LH: loop header
LB: loop body
LE: loop exit
PB: predicated region body
PF: predicated region fallthrough
CT: control target
= control target key end

     0   :  { %s2605_s15 = smov 0   ;;  %s2607_s16 = smov 0   ;;  %s3375_s0 = inlined_call_operand.vmem [shape: bf16[2,288,16], index: 0, kind: input, shape index: {}]   ;;  %s3376_s1 = inlined_call_operand.vmem [shape: bf16[4,16,128], index: 1, kind: input, shape index: {}]   ;;  %s3377_s2 = inlined_call_operand.vmem [shape: f32[1,128], index: 2, kind: input, shape index: {}]   ;;  %s3378_s3 = inlined_call_operand.vmem [shape: f32[1,128], index: 3, kind: input, shape index: {}]   ;;  %s3379_s4 = inlined_call_operand.vmem [shape: f32[2,240,128], index: 4, kind: output, shape index: {}]  }
   0x1   :  { %s2609_s17 = smov 0  }
   0x2 LB: > { %s26_s18 = sadd.s32 1, %s2572_s16  ;;  %p1891_p0 = scmp.ge.s32.totalorder %s2576_s17, 1  ;;  %s2576_s17 = sphi %s2609_s17, %s14_s17   ;;  %s2572_s16 = sphi %s2607_s16, %s3394_s16   ;;  %s2568_s15 = sphi %s2605_s15, %s3393_s15  }
   0x3   : > { %p28_p1 = scmp.ge.s32.totalorder %s26_s18, 2  ;;  %p201_p2 = scmp.lt.s32.totalorder %s2576_s17, 3 }
   0x5   : > { %s3396_s18 = smov (%p28_p1, %s26_s18), 0  ;;  %p202_p3 = pnand %p1891_p0, %p201_p2 }
   0x6   : > { %v2502_v0 = vld [vmem:[%s3376_s1 + $0x8] sm:$0xff] (!%p202_p3)   ;;  %v2578_v1 = vmov (!%p202_p3), 0.0   ;;  %v2503_v2 = vld [vmem:[%s3376_s1 + $0x10] sm:$0xff] (!%p202_p3)   ;;  %vm2579_vm0 = vmmov (!%p202_p3), 0   ;;  %p240_p4 = scmp.lt.s32.totalorder (!%p202_p3), %s2568_s15, 1  ;;  %vm382_vm1 = vcmask (!%p202_p3), 130048  }
   0x7   : > { %205 = sbr.rel (%p202_p3) target bundleno = 623 (0x26f), region = 36  ;;  %2076 = vmatprep.subr.bf16.mxu1 (!%p202_p3), %v2578_v1  ;;  %2200 = vmatprep.subr.bf16.mxu0 (!%p202_p3), %v2578_v1  ;;  %v2505_v3 = vld [vmem:[%s3376_s1] sm:$0xff] (!%p202_p3)   ;;  %v2507_v4 = vld [vmem:[%s3376_s1 + $0x18] sm:$0xff] (!%p202_p3)  }
   0x8   : > { %2077 = vmatpush3.bf16.msra.mxu1 (!%p202_p3), %v2502_v0  ;;  %2078 = vmatprep.mubr.msk.bf16.mxu1 (!%p202_p3), %vm2579_vm0, %v2578_v1 }
   0x9   : > { %2201 = vmatpush3.bf16.msra.mxu0 (!%p202_p3), %v2503_v2  ;;  %2138 = vmatprep.subr.bf16.mxu1 (!%p202_p3), %v2578_v1 }
   0xa   : > { %2202 = vmatprep.mubr.msk.bf16.mxu0 (!%p202_p3), %vm2579_vm0, %v2578_v1  ;;  %2262 = vmatprep.subr.bf16.mxu0 (!%p202_p3), %v2578_v1 }
   0xe   : > { %s3398_s15 = smov (!%p240_p4, %s2568_s15), 1 }
   0xf   : > { %s2474_s23 = smul.u32 144, %s3398_s15 }
  0x10   : > { %s2475_s9 = smul.u32 240, %s3398_s15 }
  0x11   : > { %s2643_s26 = scalar_lea.vmem %s3375_s0, %s2474_s23 }
  0x12   : > { %v2652_v5 = vld [vmem:[%s2643_s26 + $0x8] sm:$0xff]   ;;  %v2506_v6 = vld [vmem:[%s2643_s26 + $0x10] sm:$0xff]   ;;  %v2509_v8 = vld [vmem:[%s2643_s26 + $0x18] sm:$0xff]   ;;  %s3194_s12 = scalar_lea.vmem %s3379_s4, %s2475_s9 }
  0x13   : > { %2079 = vmatmul.mubr.msk.bf16.vlgmr.msra.gmra.mrb[0].mxu1 %vm382_vm1, %v2652_v5  ;;  %2203 = vmatmul.mubr.msk.bf16.vlgmr.msra.gmra.mrb[0].mxu0 %vm382_vm1, %v2506_v6  ;;  %v2663_v7 = vld [vmem:[%s2643_s26 + $0x10] sm:$0xff]   ;;  %v2674_v9 = vld [vmem:[%s2643_s26 + $0x18] sm:$0xff]   ;;  %v2511_v10 = vld [vmem:[%s2643_s26 + $0x20] sm:$0xff]  }
  0x14   : > { %2139 = vmatpush3.bf16.msra.mxu1 %v2505_v3  ;;  %2263 = vmatpush3.bf16.msra.mxu0 %v2507_v4  ;;  %v2685_v11 = vld [vmem:[%s2643_s26 + $0x20] sm:$0xff]   ;;  %v2513_v12 = vld [vmem:[%s2643_s26 + $0x28] sm:$0xff]   ;;  %v2515_v14 = vld [vmem:[%s2643_s26 + $0x30] sm:$0xff]  }
  0x15   : > { %2082 = vmatprep.mubr.msk.bf16.mxu1 %vm2579_vm0, %v2578_v1  ;;  %2206 = vmatprep.mubr.msk.bf16.mxu0 %vm2579_vm0, %v2578_v1  ;;  %v2696_v13 = vld [vmem:[%s2643_s26 + $0x28] sm:$0xff]   ;;  %v2707_v15 = vld [vmem:[%s2643_s26 + $0x30] sm:$0xff]   ;;  %v2517_v16 = vld [vmem:[%s2643_s26 + $0x38] sm:$0xff]  }
  0x16   : > { %v2718_v17 = vld [vmem:[%s2643_s26 + $0x38] sm:$0xff]   ;;  %v2519_v18 = vld [vmem:[%s2643_s26 + $0x40] sm:$0xff]   ;;  %v2521_v20 = vld [vmem:[%s2643_s26 + $0x48] sm:$0xff]  }
  0x17   : > { %v2729_v19 = vld [vmem:[%s2643_s26 + $0x40] sm:$0xff]   ;;  %v2740_v21 = vld [vmem:[%s2643_s26 + $0x48] sm:$0xff]   ;;  %v2523_v22 = vld [vmem:[%s2643_s26 + $0x50] sm:$0xff]  }
  0x18   : > { %v2751_v23 = vld [vmem:[%s2643_s26 + $0x50] sm:$0xff]   ;;  %v2525_v24 = vld [vmem:[%s2643_s26 + $0x58] sm:$0xff]   ;;  %v2527_v26 = vld [vmem:[%s2643_s26 + $0x60] sm:$0xff]  }
  0x19   : > { %v2762_v25 = vld [vmem:[%s2643_s26 + $0x58] sm:$0xff]   ;;  %v2773_v27 = vld [vmem:[%s2643_s26 + $0x60] sm:$0xff]   ;;  %v2529_v28 = vld [vmem:[%s2643_s26 + $0x68] sm:$0xff]  }
  0x1a   : > { %v2784_v29 = vld [vmem:[%s2643_s26 + $0x68] sm:$0xff]   ;;  %v2531_v30 = vld [vmem:[%s2643_s26 + $0x70] sm:$0xff]   ;;  %v2533_v32 = vld [vmem:[%s2643_s26 + $0x78] sm:$0xff]  }
  0x1b   : > { %2083 = vmatmul.mubr.msk.bf16.gmra.mrb[4].mxu1 %vm382_vm1, %v2663_v7  ;;  %2207 = vmatmul.mubr.msk.bf16.gmra.mrb[4].mxu0 %vm382_vm1, %v2509_v8  ;;  %v2795_v31 = vld [vmem:[%s2643_s26 + $0x70] sm:$0xff]   ;;  %v2534_v33 = vld [vmem:[%s2643_s26 + $0x78] sm:$0xff]   ;;  %v2535_v34 = vld [vmem:[%s2643_s26 + $0x80] sm:$0xff]  }
  0x1c   : > { %2086 = vmatprep.mubr.msk.bf16.mxu1 %vm2579_vm0, %v2578_v1  ;;  %2210 = vmatprep.mubr.msk.bf16.mxu0 %vm2579_vm0, %v2578_v1  ;;  %v2536_v35 = vld [vmem:[%s2643_s26] sm:$0xff]   ;;  %v2537_v36 = vld [vmem:[%s2643_s26 + $0x18] sm:$0xff]   ;;  %v2539_v38 = vld [vmem:[%s2643_s26 + $0x28] sm:$0xff]  }
  0x1d   : > { %v2538_v37 = vld [vmem:[%s2643_s26 + $0x20] sm:$0xff]   ;;  %v2540_v39 = vld [vmem:[%s2643_s26 + $0x30] sm:$0xff]   ;;  %v2541_v40 = vld [vmem:[%s2643_s26 + $0x38] sm:$0xff]  }
  0x1e   : > { %v2542_v41 = vld [vmem:[%s2643_s26 + $0x40] sm:$0xff]   ;;  %v2543_v42 = vld [vmem:[%s2643_s26 + $0x48] sm:$0xff]   ;;  %v2544_v43 = vld [vmem:[%s2643_s26 + $0x50] sm:$0xff]  }
  0x1f   : > { %v2545_v44 = vld [vmem:[%s2643_s26 + $0x58] sm:$0xff]   ;;  %v2546_v45 = vld [vmem:[%s2643_s26 + $0x60] sm:$0xff]   ;;  %v2547_v46 = vld [vmem:[%s2643_s26 + $0x68] sm:$0xff]  }
  0x20   : > { %v2548_v47 = vld [vmem:[%s2643_s26 + $0x70] sm:$0xff]   ;;  %v2549_v48 = vld [vmem:[%s2643_s26 + $0x78] sm:$0xff]   ;;  %v2550_v49 = vld [vmem:[%s2643_s26 + $0x80] sm:$0xff]  }
  0x21   : > { %v2551_v50 = vld [vmem:[%s2643_s26 + $0x88] sm:$0xff]  }
  0x23   : > { %2087 = vmatmul.mubr.msk.bf16.gmra.mrb[8].mxu1 %vm382_vm1, %v2674_v9  ;;  %2211 = vmatmul.mubr.msk.bf16.gmra.mrb[8].mxu0 %vm382_vm1, %v2511_v10 }
  0x24   : > { %2090 = vmatprep.mubr.msk.bf16.mxu1 %vm2579_vm0, %v2578_v1  ;;  %2214 = vmatprep.mubr.msk.bf16.mxu0 %vm2579_vm0, %v2578_v1 }
  0x2b   : > { %2091 = vmatmul.mubr.msk.bf16.gmra.mrb[12].mxu1 %vm382_vm1, %v2685_v11  ;;  %2215 = vmatmul.mubr.msk.bf16.gmra.mrb[12].mxu0 %vm382_vm1, %v2513_v12 }
  0x2c   : > { %2094 = vmatprep.mubr.msk.bf16.mxu1 %vm2579_vm0, %v2578_v1  ;;  %2218 = vmatprep.mubr.msk.bf16.mxu0 %vm2579_vm0, %v2578_v1 }
  0x33   : > { %2095 = vmatmul.mubr.msk.bf16.gmra.mrb[16].mxu1 %vm382_vm1, %v2696_v13  ;;  %2219 = vmatmul.mubr.msk.bf16.gmra.mrb[16].mxu0 %vm382_vm1, %v2515_v14 }
  0x34   : > { %2098 = vmatprep.mubr.msk.bf16.mxu1 %vm2579_vm0, %v2578_v1  ;;  %2222 = vmatprep.mubr.msk.bf16.mxu0 %vm2579_vm0, %v2578_v1 }
  0x3b   : > { %2099 = vmatmul.mubr.msk.bf16.gmra.mrb[20].mxu1 %vm382_vm1, %v2707_v15  ;;  %2223 = vmatmul.mubr.msk.bf16.gmra.mrb[20].mxu0 %vm382_vm1, %v2517_v16 }
  0x3c   : > { %2102 = vmatprep.mubr.msk.bf16.mxu1 %vm2579_vm0, %v2578_v1  ;;  %2226 = vmatprep.mubr.msk.bf16.mxu0 %vm2579_vm0, %v2578_v1 }
  0x43   : > { %2103 = vmatmul.mubr.msk.bf16.gmra.mrb[24].mxu1 %vm382_vm1, %v2718_v17  ;;  %2227 = vmatmul.mubr.msk.bf16.gmra.mrb[24].mxu0 %vm382_vm1, %v2519_v18 }
  0x44   : > { %2106 = vmatprep.mubr.msk.bf16.mxu1 %vm2579_vm0, %v2578_v1  ;;  %2230 = vmatprep.mubr.msk.bf16.mxu0 %vm2579_vm0, %v2578_v1 }
  0x4b   : > { %2107 = vmatmul.mubr.msk.bf16.gmra.mrb[28].mxu1 %vm382_vm1, %v2729_v19  ;;  %2231 = vmatmul.mubr.msk.bf16.gmra.mrb[28].mxu0 %vm382_vm1, %v2521_v20 }
  0x4c   : > { %2110 = vmatprep.mubr.msk.bf16.mxu1 %vm2579_vm0, %v2578_v1  ;;  %2234 = vmatprep.mubr.msk.bf16.mxu0 %vm2579_vm0, %v2578_v1 }
  0x53   : > { %2111 = vmatmul.mubr.msk.bf16.gmra.mrb[32].mxu1 %vm382_vm1, %v2740_v21  ;;  %2235 = vmatmul.mubr.msk.bf16.gmra.mrb[32].mxu0 %vm382_vm1, %v2523_v22 }
  0x54   : > { %2114 = vmatprep.mubr.msk.bf16.mxu1 %vm2579_vm0, %v2578_v1  ;;  %2238 = vmatprep.mubr.msk.bf16.mxu0 %vm2579_vm0, %v2578_v1 }
  0x5b   : > { %2115 = vmatmul.mubr.msk.bf16.gmra.mrb[36].mxu1 %vm382_vm1, %v2751_v23  ;;  %2239 = vmatmul.mubr.msk.bf16.gmra.mrb[36].mxu0 %vm382_vm1, %v2525_v24 }
  0x5c   : > { %2118 = vmatprep.mubr.msk.bf16.mxu1 %vm2579_vm0, %v2578_v1  ;;  %2242 = vmatprep.mubr.msk.bf16.mxu0 %vm2579_vm0, %v2578_v1 }
  0x63   : > { %2119 = vmatmul.mubr.msk.bf16.gmra.mrb[40].mxu1 %vm382_vm1, %v2762_v25  ;;  %2243 = vmatmul.mubr.msk.bf16.gmra.mrb[40].mxu0 %vm382_vm1, %v2527_v26 }
  0x64   : > { %2122 = vmatprep.mubr.msk.bf16.mxu1 %vm2579_vm0, %v2578_v1  ;;  %2246 = vmatprep.mubr.msk.bf16.mxu0 %vm2579_vm0, %v2578_v1 }
  0x6b   : > { %2123 = vmatmul.mubr.msk.bf16.gmra.mrb[44].mxu1 %vm382_vm1, %v2773_v27  ;;  %2247 = vmatmul.mubr.msk.bf16.gmra.mrb[44].mxu0 %vm382_vm1, %v2529_v28 }
  0x6c   : > { %2126 = vmatprep.mubr.msk.bf16.mxu1 %vm2579_vm0, %v2578_v1  ;;  %2250 = vmatprep.mubr.msk.bf16.mxu0 %vm2579_vm0, %v2578_v1 }
  0x73   : > { %2127 = vmatmul.mubr.msk.bf16.gmra.mrb[48].mxu1 %vm382_vm1, %v2784_v29  ;;  %2251 = vmatmul.mubr.msk.bf16.gmra.mrb[48].mxu0 %vm382_vm1, %v2531_v30 }
  0x74   : > { %2130 = vmatprep.mubr.msk.bf16.mxu1 %vm2579_vm0, %v2578_v1  ;;  %2254 = vmatprep.mubr.msk.bf16.mxu0 %vm2579_vm0, %v2578_v1 }
  0x7b   : > { %2131 = vmatmul.mubr.msk.bf16.gmra.mrb[52].mxu1 %vm382_vm1, %v2795_v31  ;;  %2255 = vmatmul.mubr.msk.bf16.gmra.mrb[52].mxu0 %vm382_vm1, %v2533_v32 }
  0x7c   : > { %2134 = vmatprep.mubr.msk.bf16.mxu1 %vm2579_vm0, %v2578_v1  ;;  %2258 = vmatprep.mubr.msk.bf16.mxu0 %vm2579_vm0, %v2578_v1 }
  0x83   : > { %2135 = vmatmul.mubr.msk.bf16.gmra.mrb[56].mxu1 %vm382_vm1, %v2534_v33  ;;  %2259 = vmatmul.mubr.msk.bf16.gmra.mrb[56].mxu0 %vm382_vm1, %v2535_v34 }
  0x84   : > { %2140 = vmatprep.mubr.msk.bf16.mxu1 %vm2579_vm0, %v2578_v1  ;;  %2264 = vmatprep.mubr.msk.bf16.mxu0 %vm2579_vm0, %v2578_v1 }
  0x8b   : > { %2141 = vmatmul.mubr.msk.bf16.vlgmr.msra.gmra.mrb[0].mxu1 %vm382_vm1, %v2536_v35  ;;  %2265 = vmatmul.mubr.msk.bf16.vlgmr.msra.gmra.mrb[0].mxu0 %vm382_vm1, %v2537_v36 }
  0x8c   : > { %2144 = vmatprep.mubr.msk.bf16.mxu1 %vm2579_vm0, %v2578_v1  ;;  %2268 = vmatprep.mubr.msk.bf16.mxu0 %vm2579_vm0, %v2578_v1 }
  0x93   : > { %2145 = vmatmul.mubr.msk.bf16.gmra.mrb[4].mxu1 %vm382_vm1, %v2652_v5  ;;  %2269 = vmatmul.mubr.msk.bf16.gmra.mrb[4].mxu0 %vm382_vm1, %v2538_v37 }
  0x94   : > { %2148 = vmatprep.mubr.msk.bf16.mxu1 %vm2579_vm0, %v2578_v1  ;;  %2272 = vmatprep.mubr.msk.bf16.mxu0 %vm2579_vm0, %v2578_v1 }
  0x9b   : > { %2149 = vmatmul.mubr.msk.bf16.gmra.mrb[8].mxu1 %vm382_vm1, %v2663_v7  ;;  %2273 = vmatmul.mubr.msk.bf16.gmra.mrb[8].mxu0 %vm382_vm1, %v2539_v38 }
  0x9c   : > { %2152 = vmatprep.mubr.msk.bf16.mxu1 %vm2579_vm0, %v2578_v1  ;;  %2276 = vmatprep.mubr.msk.bf16.mxu0 %vm2579_vm0, %v2578_v1 }
  0xa3   : > { %2153 = vmatmul.mubr.msk.bf16.gmra.mrb[12].mxu1 %vm382_vm1, %v2674_v9  ;;  %2277 = vmatmul.mubr.msk.bf16.gmra.mrb[12].mxu0 %vm382_vm1, %v2540_v39 }
  0xa4   : > { %2156 = vmatprep.mubr.msk.bf16.mxu1 %vm2579_vm0, %v2578_v1  ;;  %2280 = vmatprep.mubr.msk.bf16.mxu0 %vm2579_vm0, %v2578_v1 }
  0xab   : > { %2157 = vmatmul.mubr.msk.bf16.gmra.mrb[16].mxu1 %vm382_vm1, %v2685_v11  ;;  %2281 = vmatmul.mubr.msk.bf16.gmra.mrb[16].mxu0 %vm382_vm1, %v2541_v40 }
  0xac   : > { %2160 = vmatprep.mubr.msk.bf16.mxu1 %vm2579_vm0, %v2578_v1  ;;  %2284 = vmatprep.mubr.msk.bf16.mxu0 %vm2579_vm0, %v2578_v1 }
  0xb3   : > { %2161 = vmatmul.mubr.msk.bf16.gmra.mrb[20].mxu1 %vm382_vm1, %v2696_v13  ;;  %2285 = vmatmul.mubr.msk.bf16.gmra.mrb[20].mxu0 %vm382_vm1, %v2542_v41 }
  0xb4   : > { %2164 = vmatprep.mubr.msk.bf16.mxu1 %vm2579_vm0, %v2578_v1  ;;  %2288 = vmatprep.mubr.msk.bf16.mxu0 %vm2579_vm0, %v2578_v1 }
  0xbb   : > { %2165 = vmatmul.mubr.msk.bf16.gmra.mrb[24].mxu1 %vm382_vm1, %v2707_v15  ;;  %2289 = vmatmul.mubr.msk.bf16.gmra.mrb[24].mxu0 %vm382_vm1, %v2543_v42 }
  0xbc   : > { %2168 = vmatprep.mubr.msk.bf16.mxu1 %vm2579_vm0, %v2578_v1  ;;  %2292 = vmatprep.mubr.msk.bf16.mxu0 %vm2579_vm0, %v2578_v1 }
  0xc3   : > { %2169 = vmatmul.mubr.msk.bf16.gmra.mrb[28].mxu1 %vm382_vm1, %v2718_v17  ;;  %2293 = vmatmul.mubr.msk.bf16.gmra.mrb[28].mxu0 %vm382_vm1, %v2544_v43 }
  0xc4   : > { %2172 = vmatprep.mubr.msk.bf16.mxu1 %vm2579_vm0, %v2578_v1  ;;  %2296 = vmatprep.mubr.msk.bf16.mxu0 %vm2579_vm0, %v2578_v1 }
  0xcb   : > { %2173 = vmatmul.mubr.msk.bf16.gmra.mrb[32].mxu1 %vm382_vm1, %v2729_v19  ;;  %2297 = vmatmul.mubr.msk.bf16.gmra.mrb[32].mxu0 %vm382_vm1, %v2545_v44 }
  0xcc   : > { %2176 = vmatprep.mubr.msk.bf16.mxu1 %vm2579_vm0, %v2578_v1  ;;  %2300 = vmatprep.mubr.msk.bf16.mxu0 %vm2579_vm0, %v2578_v1 }
  0xd3   : > { %2177 = vmatmul.mubr.msk.bf16.gmra.mrb[36].mxu1 %vm382_vm1, %v2740_v21  ;;  %2301 = vmatmul.mubr.msk.bf16.gmra.mrb[36].mxu0 %vm382_vm1, %v2546_v45 }
  0xd4   : > { %2180 = vmatprep.mubr.msk.bf16.mxu1 %vm2579_vm0, %v2578_v1  ;;  %2304 = vmatprep.mubr.msk.bf16.mxu0 %vm2579_vm0, %v2578_v1 }
  0xdb   : > { %2181 = vmatmul.mubr.msk.bf16.gmra.mrb[40].mxu1 %vm382_vm1, %v2751_v23  ;;  %2305 = vmatmul.mubr.msk.bf16.gmra.mrb[40].mxu0 %vm382_vm1, %v2547_v46 }
  0xdc   : > { %2184 = vmatprep.mubr.msk.bf16.mxu1 %vm2579_vm0, %v2578_v1  ;;  %2308 = vmatprep.mubr.msk.bf16.mxu0 %vm2579_vm0, %v2578_v1 }
  0xe3   : > { %2185 = vmatmul.mubr.msk.bf16.gmra.mrb[44].mxu1 %vm382_vm1, %v2762_v25  ;;  %2309 = vmatmul.mubr.msk.bf16.gmra.mrb[44].mxu0 %vm382_vm1, %v2548_v47 }
  0xe4   : > { %2188 = vmatprep.mubr.msk.bf16.mxu1 %vm2579_vm0, %v2578_v1  ;;  %2312 = vmatprep.mubr.msk.bf16.mxu0 %vm2579_vm0, %v2578_v1 }
  0xeb   : > { %2189 = vmatmul.mubr.msk.bf16.gmra.mrb[48].mxu1 %vm382_vm1, %v2773_v27  ;;  %2313 = vmatmul.mubr.msk.bf16.gmra.mrb[48].mxu0 %vm382_vm1, %v2549_v48 }
  0xec   : > { %2192 = vmatprep.mubr.msk.bf16.mxu1 %vm2579_vm0, %v2578_v1  ;;  %2316 = vmatprep.mubr.msk.bf16.mxu0 %vm2579_vm0, %v2578_v1 }
  0xf3   : > { %2193 = vmatmul.mubr.msk.bf16.gmra.mrb[52].mxu1 %vm382_vm1, %v2784_v29  ;;  %2317 = vmatmul.mubr.msk.bf16.gmra.mrb[52].mxu0 %vm382_vm1, %v2550_v49 }
  0xf4   : > { %2196 = vmatprep.mubr.msk.bf16.mxu1 %vm2579_vm0, %v2578_v1  ;;  %2320 = vmatprep.mubr.msk.bf16.mxu0 %vm2579_vm0, %v2578_v1 }
  0xfb   : > { %2197 = vmatmul.mubr.msk.bf16.gmra.mrb[56].mxu1 %vm382_vm1, %v2795_v31  ;;  %2321 = vmatmul.mubr.msk.bf16.gmra.mrb[56].mxu0 %vm382_vm1, %v2551_v50 }
 0x15e   : > { %v629_v51 = vpop.f32.mrb[0].mxu1  ;;  %v1283_v52 = vpop.f32.mrb[0].mxu0 }
 0x15f   : > { %v2142_v53 = vpop.f32.mrb[1].mxu1  ;;  %v2929_v54 = vadd.f32 %v1283_v52, %v629_v51  ;;  %v2266_v55 = vpop.f32.mrb[1].mxu0 }
 0x160   : > { %v632_v56 = vpop.f32.mrb[2].mxu1  ;;  %v1286_v57 = vpop.f32.mrb[2].mxu0 }
 0x161   : > { %v2143_v58 = vpop.f32.mrb[3].mxu1  ;;  %v2931_v59 = vadd.f32 %v1286_v57, %v632_v56  ;;  %v2267_v60 = vpop.f32.mrb[3].mxu0 }
 0x163   : > { %v1432_v35 = vadd.f32 %v2931_v59, %v2929_v54 }
 0x166   : > { %v637_v61 = vpop.f32.mrb[4].mxu1  ;;  %v1291_v62 = vpop.f32.mrb[4].mxu0 }
 0x167   : > { %v2146_v63 = vpop.f32.mrb[5].mxu1  ;;  %v2933_v0 = vadd.f32 %v1291_v62, %v637_v61  ;;  %v2270_v1 = vpop.f32.mrb[5].mxu0 }
 0x168   : > { %v640_v2 = vpop.f32.mrb[6].mxu1  ;;  %v1294_v3 = vpop.f32.mrb[6].mxu0 }
 0x169   : > { %v2147_v4 = vpop.f32.mrb[7].mxu1  ;;  %v2935_v5 = vadd.f32 %v1294_v3, %v640_v2  ;;  %v2271_v6 = vpop.f32.mrb[7].mxu0  ;;  %v1433_v38 = vadd.f32 %v2933_v0, %v1432_v35 }
 0x16b   : > { %v1434_v42 = vadd.f32 %v2935_v5, %v1433_v38 }
 0x16e   : > { %v645_v7 = vpop.f32.mrb[8].mxu1  ;;  %v1299_v8 = vpop.f32.mrb[8].mxu0 }
 0x16f   : > { %v2150_v9 = vpop.f32.mrb[9].mxu1  ;;  %v2937_v10 = vadd.f32 %v1299_v8, %v645_v7  ;;  %v2274_v11 = vpop.f32.mrb[9].mxu0 }
 0x170   : > { %v648_v12 = vpop.f32.mrb[10].mxu1  ;;  %v1302_v13 = vpop.f32.mrb[10].mxu0 }
 0x171   : > { %v2151_v14 = vpop.f32.mrb[11].mxu1  ;;  %v2939_v15 = vadd.f32 %v1302_v13, %v648_v12  ;;  %v2275_v16 = vpop.f32.mrb[11].mxu0  ;;  %v1435_v48 = vadd.f32 %v2937_v10, %v1434_v42 }
 0x173   : > { %v1436_v51 = vadd.f32 %v2939_v15, %v1435_v48 }
 0x176   : > { %v653_v17 = vpop.f32.mrb[12].mxu1  ;;  %v1307_v18 = vpop.f32.mrb[12].mxu0 }
 0x177   : > { %v2154_v19 = vpop.f32.mrb[13].mxu1  ;;  %v2941_v20 = vadd.f32 %v1307_v18, %v653_v17  ;;  %v2278_v21 = vpop.f32.mrb[13].mxu0 }
 0x178   : > { %v656_v22 = vpop.f32.mrb[14].mxu1  ;;  %v1310_v23 = vpop.f32.mrb[14].mxu0 }
 0x179   : > { %v2155_v24 = vpop.f32.mrb[15].mxu1  ;;  %v2943_v25 = vadd.f32 %v1310_v23, %v656_v22  ;;  %v2279_v26 = vpop.f32.mrb[15].mxu0  ;;  %v1437_v56 = vadd.f32 %v2941_v20, %v1436_v51 }
 0x17b   : > { %v1438_v2 = vadd.f32 %v2943_v25, %v1437_v56 }
 0x17e   : > { %v661_v27 = vpop.f32.mrb[16].mxu1  ;;  %v1315_v28 = vpop.f32.mrb[16].mxu0 }
 0x17f   : > { %v2158_v29 = vpop.f32.mrb[17].mxu1  ;;  %v2945_v30 = vadd.f32 %v1315_v28, %v661_v27  ;;  %v2282_v31 = vpop.f32.mrb[17].mxu0 }
 0x180   : > { %v664_v32 = vpop.f32.mrb[18].mxu1  ;;  %v1318_v33 = vpop.f32.mrb[18].mxu0 }
 0x181   : > { %v2159_v34 = vpop.f32.mrb[19].mxu1  ;;  %v2949_v36 = vadd.f32 %v1318_v33, %v664_v32  ;;  %v2283_v37 = vpop.f32.mrb[19].mxu0  ;;  %v1439_v3 = vadd.f32 %v2945_v30, %v1438_v2 }
 0x183   : > { %v1440_v14 = vadd.f32 %v2949_v36, %v1439_v3 }
 0x186   : > { %v669_v39 = vpop.f32.mrb[20].mxu1  ;;  %v1323_v40 = vpop.f32.mrb[20].mxu0 }
 0x187   : > { %v2162_v41 = vpop.f32.mrb[21].mxu1  ;;  %v2953_v43 = vadd.f32 %v1323_v40, %v669_v39  ;;  %v2286_v44 = vpop.f32.mrb[21].mxu0 }
 0x188   : > { %v672_v45 = vpop.f32.mrb[22].mxu1  ;;  %v1326_v46 = vpop.f32.mrb[22].mxu0 }
 0x189   : > { %v2163_v47 = vpop.f32.mrb[23].mxu1  ;;  %v2956_v49 = vadd.f32 %v1326_v46, %v672_v45  ;;  %v2287_v50 = vpop.f32.mrb[23].mxu0  ;;  %v1441_v18 = vadd.f32 %v2953_v43, %v1440_v14 }
 0x18b   : > { %v1442_v23 = vadd.f32 %v2956_v49, %v1441_v18 }
 0x18e   : > { %v677_v52 = vpop.f32.mrb[24].mxu1  ;;  %v1331_v53 = vpop.f32.mrb[24].mxu0 }
 0x18f   : > { %v2166_v55 = vpop.f32.mrb[25].mxu1  ;;  %v2960_v57 = vadd.f32 %v1331_v53, %v677_v52  ;;  %v2290_v58 = vpop.f32.mrb[25].mxu0 }
 0x190   : > { %v680_v60 = vpop.f32.mrb[26].mxu1  ;;  %v1334_v61 = vpop.f32.mrb[26].mxu0 }
 0x191   : > { %v2167_v62 = vpop.f32.mrb[27].mxu1  ;;  %v2962_v63 = vadd.f32 %v1334_v61, %v680_v60  ;;  %v2291_v1 = vpop.f32.mrb[27].mxu0  ;;  %v1443_v31 = vadd.f32 %v2960_v57, %v1442_v23 }
 0x193   : > { %v1444_v34 = vadd.f32 %v2962_v63, %v1443_v31 }
 0x196   : > { %v685_v4 = vpop.f32.mrb[28].mxu1  ;;  %v1339_v6 = vpop.f32.mrb[28].mxu0 }
 0x197   : > { %v2170_v7 = vpop.f32.mrb[29].mxu1  ;;  %v2966_v8 = vadd.f32 %v1339_v6, %v685_v4  ;;  %v2294_v9 = vpop.f32.mrb[29].mxu0 }
 0x198   : > { %v688_v11 = vpop.f32.mrb[30].mxu1  ;;  %v1342_v12 = vpop.f32.mrb[30].mxu0 }
 0x199   : > { %v2171_v13 = vpop.f32.mrb[31].mxu1  ;;  %v2969_v16 = vadd.f32 %v1342_v12, %v688_v11  ;;  %v2295_v17 = vpop.f32.mrb[31].mxu0  ;;  %v1445_v39 = vadd.f32 %v2966_v8, %v1444_v34 }
 0x19b   : > { %v1446_v48 = vadd.f32 %v2969_v16, %v1445_v39 }
 0x19e   : > { %v693_v19 = vpop.f32.mrb[32].mxu1  ;;  %v1347_v21 = vpop.f32.mrb[32].mxu0 }
 0x19f   : > { %v2174_v22 = vpop.f32.mrb[33].mxu1  ;;  %v2973_v24 = vadd.f32 %v1347_v21, %v693_v19  ;;  %v2298_v26 = vpop.f32.mrb[33].mxu0 }
 0x1a0   : > { %v696_v27 = vpop.f32.mrb[34].mxu1  ;;  %v1350_v28 = vpop.f32.mrb[34].mxu0 }
 0x1a1   : > { %v2175_v29 = vpop.f32.mrb[35].mxu1  ;;  %v2976_v32 = vadd.f32 %v1350_v28, %v696_v27  ;;  %v2299_v33 = vpop.f32.mrb[35].mxu0  ;;  %v1447_v50 = vadd.f32 %v2973_v24, %v1446_v48 }
 0x1a3   : > { %v1448_v62 = vadd.f32 %v2976_v32, %v1447_v50 }
 0x1a6   : > { %v701_v35 = vpop.f32.mrb[36].mxu1  ;;  %v1355_v37 = vpop.f32.mrb[36].mxu0 }
 0x1a7   : > { %v2178_v38 = vpop.f32.mrb[37].mxu1  ;;  %v2980_v40 = vadd.f32 %v1355_v37, %v701_v35  ;;  %v2302_v41 = vpop.f32.mrb[37].mxu0 }
 0x1a8   : > { %v704_v42 = vpop.f32.mrb[38].mxu1  ;;  %v1358_v44 = vpop.f32.mrb[38].mxu0 }
 0x1a9   : > { %v2179_v45 = vpop.f32.mrb[39].mxu1  ;;  %v2982_v46 = vadd.f32 %v1358_v44, %v704_v42  ;;  %v2303_v47 = vpop.f32.mrb[39].mxu0  ;;  %v1449_v3 = vadd.f32 %v2980_v40, %v1448_v62 }
 0x1ab   : > { %v1450_v9 = vadd.f32 %v2982_v46, %v1449_v3 }
 0x1ae   : > { %v709_v51 = vpop.f32.mrb[40].mxu1  ;;  %v1363_v52 = vpop.f32.mrb[40].mxu0 }
 0x1af   : > { %v2182_v53 = vpop.f32.mrb[41].mxu1  ;;  %v2986_v55 = vadd.f32 %v1363_v52, %v709_v51  ;;  %v2306_v56 = vpop.f32.mrb[41].mxu0 }
 0x1b0   : > { %v712_v58 = vpop.f32.mrb[42].mxu1  ;;  %v1366_v60 = vpop.f32.mrb[42].mxu0 }
 0x1b1   : > { %v2183_v61 = vpop.f32.mrb[43].mxu1  ;;  %v2989_v1 = vadd.f32 %v1366_v60, %v712_v58  ;;  %v2307_v2 = vpop.f32.mrb[43].mxu0  ;;  %v1451_v18 = vadd.f32 %v2986_v55, %v1450_v9 }
 0x1b3   : > { %v1452_v22 = vadd.f32 %v2989_v1, %v1451_v18 }
 0x1b6   : > { %v717_v4 = vpop.f32.mrb[44].mxu1  ;;  %v1371_v6 = vpop.f32.mrb[44].mxu0 }
 0x1b7   : > { %v2186_v7 = vpop.f32.mrb[45].mxu1  ;;  %v2993_v11 = vadd.f32 %v1371_v6, %v717_v4  ;;  %v2310_v12 = vpop.f32.mrb[45].mxu0 }
 0x1b8   : > { %v720_v13 = vpop.f32.mrb[46].mxu1  ;;  %v1374_v14 = vpop.f32.mrb[46].mxu0 }
 0x1b9   : > { %v2187_v17 = vpop.f32.mrb[47].mxu1  ;;  %v2996_v19 = vadd.f32 %v1374_v14, %v720_v13  ;;  %v2311_v21 = vpop.f32.mrb[47].mxu0  ;;  %v1453_v28 = vadd.f32 %v2993_v11, %v1452_v22 }
 0x1bb   : > { %v1454_v39 = vadd.f32 %v2996_v19, %v1453_v28 }
 0x1be   : > { %v725_v23 = vpop.f32.mrb[48].mxu1  ;;  %v1379_v26 = vpop.f32.mrb[48].mxu0 }
 0x1bf   : > { %v2190_v27 = vpop.f32.mrb[49].mxu1  ;;  %v3000_v29 = vadd.f32 %v1379_v26, %v725_v23  ;;  %v2314_v31 = vpop.f32.mrb[49].mxu0 }
 0x1c0   : > { %v728_v33 = vpop.f32.mrb[50].mxu1  ;;  %v1382_v34 = vpop.f32.mrb[50].mxu0 }
 0x1c1   : > { %v2191_v35 = vpop.f32.mrb[51].mxu1  ;;  %v3002_v37 = vadd.f32 %v1382_v34, %v728_v33  ;;  %v2315_v38 = vpop.f32.mrb[51].mxu0  ;;  %v1455_v41 = vadd.f32 %v3000_v29, %v1454_v39 }
 0x1c3   : > { %v1456_v53 = vadd.f32 %v3002_v37, %v1455_v41 }
 0x1c6   : > { %v733_v42 = vpop.f32.mrb[52].mxu1  ;;  %v1387_v44 = vpop.f32.mrb[52].mxu0 }
 0x1c7   : > { %v2194_v45 = vpop.f32.mrb[53].mxu1  ;;  %v3006_v47 = vadd.f32 %v1387_v44, %v733_v42  ;;  %v2318_v48 = vpop.f32.mrb[53].mxu0 }
 0x1c8   : > { %v736_v50 = vpop.f32.mrb[54].mxu1  ;;  %v1390_v51 = vpop.f32.mrb[54].mxu0 }
 0x1c9   : > { %v2195_v52 = vpop.f32.mrb[55].mxu1  ;;  %v3009_v56 = vadd.f32 %v1390_v51, %v736_v50  ;;  %v2319_v58 = vpop.f32.mrb[55].mxu0  ;;  %v1457_v60 = vadd.f32 %v3006_v47, %v1456_v53 }
 0x1cb   : > { %v1458_v3 = vadd.f32 %v3009_v56, %v1457_v60 }
 0x1ce   : > { %v741_v61 = vpop.f32.mrb[56].mxu1  ;;  %v1395_v62 = vpop.f32.mrb[56].mxu0 }
 0x1cf   : > { %v2198_v2 = vpop.f32.mrb[57].mxu1  ;;  %v3013_v4 = vadd.f32 %v1395_v62, %v741_v61  ;;  %v2322_v6 = vpop.f32.mrb[57].mxu0 }
 0x1d0   : > { %v744_v7 = vpop.f32.mrb[58].mxu1  ;;  %v1398_v9 = vpop.f32.mrb[58].mxu0 }
 0x1d1   : > { %v2199_v12 = vpop.f32.mrb[59].mxu1  ;;  %v1459_v13 = vadd.f32 %v3013_v4, %v1458_v3  ;;  %v3016_v14 = vadd.f32 %v1398_v9, %v744_v7  ;;  %v2323_v17 = vpop.f32.mrb[59].mxu0 }
 0x1d3   : > { %v1460_v18 = vadd.f32 %v3016_v14, %v1459_v13 }
 0x1d5   : > { %v1461_v21 = vrot.slane %v1460_v18, 4 }
 0x1d7   : > { %v1462_v22 = vadd.f32 %v1461_v21, %v1460_v18 }
 0x1d9   : > { %v1463_v23 = vrot.slane %v1462_v22, 2 }
 0x1db   : > { %v1464_v26 = vadd.f32 %v1463_v23, %v1462_v22 }
 0x1dd   : > { %v1465_v27 = vrot.slane %v1464_v26, 1 }
 0x1df   : > { %v1466_v28 = vadd.f32 %v1465_v27, %v1464_v26 }
 0x1e1   : > { %v3019_v31 = vmul.f32 0.0044444446, %v1466_v28 }
 0x1e3   : > { %v1468_v33 = vsub.f32 %v2929_v54, %v3019_v31  ;;  %v1469_v34 = vsub.f32 %v2931_v59, %v3019_v31  ;;  %v1470_v35 = vsub.f32 %v2933_v0, %v3019_v31  ;;  %v1471_v41 = vsub.f32 %v2935_v5, %v3019_v31 }
 0x1e4   : > { %v1472_v42 = vsub.f32 %v2937_v10, %v3019_v31  ;;  %v1473_v48 = vsub.f32 %v2939_v15, %v3019_v31  ;;  %v1474_v52 = vsub.f32 %v2941_v20, %v3019_v31  ;;  %v1475_v60 = vsub.f32 %v2943_v25, %v3019_v31 }
 0x1e5   : > { %v1498_v38 = vmul.f32 %v1468_v33, %v1468_v33  ;;  %v1499_v39 = vmul.f32 %v1469_v34, %v1469_v34  ;;  %v1500_v44 = vmul.f32 %v1470_v35, %v1470_v35  ;;  %v1501_v50 = vmul.f32 %v1471_v41, %v1471_v41 }
 0x1e6   : > { %v1502_v53 = vmul.f32 %v1472_v42, %v1472_v42  ;;  %v1503_v61 = vmul.f32 %v1473_v48, %v1473_v48  ;;  %v1476_v2 = vsub.f32 %v2945_v30, %v3019_v31  ;;  %v1504_v3 = vmul.f32 %v1474_v52, %v1474_v52 }
 0x1e7   : > { %v1528_v45 = vadd.f32 %v1499_v39, %v1498_v38  ;;  %v1477_v7 = vsub.f32 %v2949_v36, %v3019_v31  ;;  %v1505_v9 = vmul.f32 %v1475_v60, %v1475_v60  ;;  %v1478_v13 = vsub.f32 %v2953_v43, %v3019_v31 }
 0x1e8   : > { %v1506_v17 = vmul.f32 %v1476_v2, %v1476_v2  ;;  %v1479_v21 = vsub.f32 %v2956_v49, %v3019_v31  ;;  %v1480_v26 = vsub.f32 %v2960_v57, %v3019_v31  ;;  %v1481_v33 = vsub.f32 %v2962_v63, %v3019_v31 }
 0x1e9   : > { %v1529_v51 = vadd.f32 %v1528_v45, %v1500_v44  ;;  %v1507_v22 = vmul.f32 %v1477_v7, %v1477_v7  ;;  %v1508_v27 = vmul.f32 %v1478_v13, %v1478_v13  ;;  %v1482_v38 = vsub.f32 %v2966_v8, %v3019_v31 }
 0x1ea   : > { %v1509_v34 = vmul.f32 %v1479_v21, %v1479_v21  ;;  %v1510_v39 = vmul.f32 %v1480_v26, %v1480_v26  ;;  %v1483_v42 = vsub.f32 %v2969_v16, %v3019_v31  ;;  %v1511_v44 = vmul.f32 %v1481_v33, %v1481_v33 }
 0x1eb   : > { %v1530_v58 = vadd.f32 %v1529_v51, %v1501_v50  ;;  %v1484_v48 = vsub.f32 %v2973_v24, %v3019_v31  ;;  %v1512_v50 = vmul.f32 %v1482_v38, %v1482_v38  ;;  %v1485_v52 = vsub.f32 %v2976_v32, %v3019_v31 }
 0x1ec   : > { %v1486_v60 = vsub.f32 %v2980_v40, %v3019_v31  ;;  %v1487_v2 = vsub.f32 %v2982_v46, %v3019_v31  ;;  %v1488_v7 = vsub.f32 %v2986_v55, %v3019_v31  ;;  %v1489_v13 = vsub.f32 %v2989_v1, %v3019_v31 }
 0x1ed   : > { %v1531_v62 = vadd.f32 %v1530_v58, %v1502_v53  ;;  %v1513_v53 = vmul.f32 %v1483_v42, %v1483_v42  ;;  %v1490_v21 = vsub.f32 %v2993_v11, %v3019_v31  ;;  %v1491_v26 = vsub.f32 %v2996_v19, %v3019_v31 }
 0x1ee   : > { %v1492_v33 = vsub.f32 %v3000_v29, %v3019_v31  ;;  %v1493_v38 = vsub.f32 %v3002_v37, %v3019_v31  ;;  %v1494_v42 = vsub.f32 %v3006_v47, %v3019_v31 }
 0x1ef   : > { %v1532_v6 = vadd.f32 %v1531_v62, %v1503_v61  ;;  %v1514_v61 = vmul.f32 %v1484_v48, %v1484_v48  ;;  %v1495_v48 = vsub.f32 %v3009_v56, %v3019_v31 }
 0x1f1   : > { %v1533_v12 = vadd.f32 %v1532_v6, %v1504_v3  ;;  %v1515_v3 = vmul.f32 %v1485_v52, %v1485_v52  ;;  %v1496_v52 = vsub.f32 %v3013_v4, %v3019_v31 }
 0x1f3   : > { %v1534_v18 = vadd.f32 %v1533_v12, %v1505_v9  ;;  %v1516_v9 = vmul.f32 %v1486_v60, %v1486_v60  ;;  %v1497_v60 = vsub.f32 %v3016_v14, %v3019_v31 }
 0x1f5   : > { %v1535_v23 = vadd.f32 %v1534_v18, %v1506_v17  ;;  %v1517_v17 = vmul.f32 %v1487_v2, %v1487_v2  ;;  %v1526_v2 = vmul.f32 %v1496_v52, %v1496_v52 }
 0x1f7   : > { %v1536_v28 = vadd.f32 %v1535_v23, %v1507_v22  ;;  %v1518_v22 = vmul.f32 %v1488_v7, %v1488_v7 }
 0x1f9   : > { %v1537_v35 = vadd.f32 %v1536_v28, %v1508_v27  ;;  %v1519_v27 = vmul.f32 %v1489_v13, %v1489_v13 }
 0x1fb   : > { %v1538_v41 = vadd.f32 %v1537_v35, %v1509_v34  ;;  %v1520_v34 = vmul.f32 %v1490_v21, %v1490_v21  ;;  %v1563_v21 = vmul.f32 %v3019_v31, %v3019_v31 }
 0x1fd   : > { %v1539_v45 = vadd.f32 %v1538_v41, %v1510_v39  ;;  %v1521_v39 = vmul.f32 %v1491_v26, %v1491_v26  ;;  %v1564_v26 = vmul.f32 15.0, %v1563_v21 }
 0x1ff   : > { %v1540_v51 = vadd.f32 %v1539_v45, %v1511_v44  ;;  %v1522_v44 = vmul.f32 %v1492_v33, %v1492_v33 }
 0x201   : > { %v1541_v58 = vadd.f32 %v1540_v51, %v1512_v50  ;;  %v1523_v50 = vmul.f32 %v1493_v38, %v1493_v38  ;;  %v1568_v38 = vld [vmem:[%s3377_s2] sm:$0x1] }
 0x203   : > { %v1542_v62 = vadd.f32 %v1541_v58, %v1513_v53  ;;  %v1524_v53 = vmul.f32 %v1494_v42, %v1494_v42 }
 0x205   : > { %v1543_v6 = vadd.f32 %v1542_v62, %v1514_v61  ;;  %v1525_v61 = vmul.f32 %v1495_v48, %v1495_v48  ;;  %v1572_v48 = vld [vmem:[%s3378_s3] sm:$0x1] }
 0x207   : > { %v1544_v12 = vadd.f32 %v1543_v6, %v1515_v3  ;;  %v1527_v6 = vmul.f32 %v1497_v60, %v1497_v60 }
 0x209   : > { %v1545_v18 = vadd.f32 %v1544_v12, %v1516_v9 }
 0x20b   : > { %v1546_v23 = vadd.f32 %v1545_v18, %v1517_v17 }
 0x20d   : > { %v1547_v28 = vadd.f32 %v1546_v23, %v1518_v22 }
 0x20f   : > { %v1548_v35 = vadd.f32 %v1547_v28, %v1519_v27 }
 0x211   : > { %v1549_v41 = vadd.f32 %v1548_v35, %v1520_v34  ;;  %v1576_v35 = vlaneseq }
 0x213   : > { %v1550_v45 = vadd.f32 %v1549_v41, %v1521_v39  ;;  %v1577_v39 = vshrl.u32 %v1576_v35, 7 }
 0x215   : > { %v1551_v51 = vadd.f32 %v1550_v45, %v1522_v44  ;;  %v1578_v44 = vsub.s32 0, %v1577_v39 }
 0x217   : > { %v1552_v58 = vadd.f32 %v1551_v51, %v1523_v50 }
 0x219   : > { %v1553_v62 = vadd.f32 %v1552_v58, %v1524_v53 }
 0x21b   : > { %v1554_v3 = vadd.f32 %v1553_v62, %v1525_v61 }
 0x21d   : > { %v1555_v7 = vadd.f32 %v1554_v3, %v1526_v2 }
 0x21f   : > { %v1556_v9 = vadd.f32 %v1555_v7, %v1527_v6 }
 0x221   : > { %v1557_v12 = vrot.slane %v1556_v9, 4 }
 0x223   : > { %v1558_v13 = vadd.f32 %v1557_v12, %v1556_v9 }
 0x225   : > { %v1559_v17 = vrot.slane %v1558_v13, 2 }
 0x227   : > { %v1560_v18 = vadd.f32 %v1559_v17, %v1558_v13 }
 0x229   : > { %v1561_v22 = vrot.slane %v1560_v18, 1 }
 0x22b   : > { %v1562_v23 = vadd.f32 %v1561_v22, %v1560_v18 }
 0x22d   : > { %v1565_v27 = vsub.f32 %v1562_v23, %v1564_v26 }
 0x22f   : > { %v1566_v28 = vmul.f32 0.0044444446, %v1565_v27 }
 0x231   : > { %v1567_v33 = vmax.f32 %v1566_v28, 0.0 }
 0x233   : > { %v1569_v34 = vadd.f32 1e-05, %v1567_v33 }
 0x235   : > { %2552 = vrsqrt.f32 %v1569_v34 }
 0x23f   : > { %v2553_v41 = vpop.eup %2552 }
 0x240   : > { %v1571_v42 = vmul.f32 %v2553_v41, %v1568_v38 }
 0x242   : > { %v1573_v45 = vmul.f32 %v1571_v42, %v3019_v31  ;;  %v1579_v50 = vrot.slane %v1571_v42, %v1578_v44 }
 0x244   : > { %v1574_v51 = vsub.f32 %v1572_v48, %v1573_v45  ;;  %v1581_v52 = vmul.f32 %v2929_v54, %v1579_v50  ;;  %v1582_v53 = vmul.f32 %v2931_v59, %v1579_v50  ;;  %v1583_v58 = vmul.f32 %v2933_v0, %v1579_v50 }
 0x245   : > { %v1584_v60 = vmul.f32 %v2935_v5, %v1579_v50  ;;  %v1585_v61 = vmul.f32 %v2937_v10, %v1579_v50  ;;  %v1586_v62 = vmul.f32 %v2939_v15, %v1579_v50  ;;  %v1587_v31 = vmul.f32 %v2941_v20, %v1579_v50 }
 0x246   : > { %v1588_v2 = vmul.f32 %v2943_v25, %v1579_v50  ;;  %v1589_v3 = vmul.f32 %v2945_v30, %v1579_v50  ;;  %v1590_v6 = vmul.f32 %v2949_v36, %v1579_v50  ;;  %v1591_v54 = vmul.f32 %v2953_v43, %v1579_v50 }
 0x247   : > { %v1592_v59 = vmul.f32 %v2956_v49, %v1579_v50  ;;  %v1593_v0 = vmul.f32 %v2960_v57, %v1579_v50  ;;  %v1594_v5 = vmul.f32 %v2962_v63, %v1579_v50  ;;  %v1595_v10 = vmul.f32 %v2966_v8, %v1579_v50 }
 0x248   : > { %v1615_v7 = vrot.slane %v1574_v51, %v1578_v44  ;;  %v1596_v15 = vmul.f32 %v2969_v16, %v1579_v50  ;;  %v1597_v20 = vmul.f32 %v2973_v24, %v1579_v50  ;;  %v1598_v25 = vmul.f32 %v2976_v32, %v1579_v50 }
 0x249   : > { %v1599_v30 = vmul.f32 %v2980_v40, %v1579_v50  ;;  %v1600_v36 = vmul.f32 %v2982_v46, %v1579_v50  ;;  %v1601_v43 = vmul.f32 %v2986_v55, %v1579_v50  ;;  %v1602_v49 = vmul.f32 %v2989_v1, %v1579_v50 }
 0x24a   : > { %v1603_v57 = vmul.f32 %v2993_v11, %v1579_v50  ;;  %v1604_v63 = vmul.f32 %v2996_v19, %v1579_v50  ;;  %v1605_v8 = vmul.f32 %v3000_v29, %v1579_v50  ;;  %v1606_v16 = vmul.f32 %v3002_v37, %v1579_v50 }
 0x24b   : > { %v1607_v24 = vmul.f32 %v3006_v47, %v1579_v50  ;;  %v1608_v32 = vmul.f32 %v3009_v56, %v1579_v50  ;;  %v1609_v40 = vmul.f32 %v3013_v4, %v1579_v50  ;;  %v1610_v46 = vmul.f32 %v3016_v14, %v1579_v50 }
 0x24c   : > { %v3120_v9 = vadd.f32 %v1615_v7, %v1581_v52  ;;  %v3122_v55 = vadd.f32 %v1615_v7, %v1582_v53  ;;  %v3124_v1 = vadd.f32 %v1615_v7, %v1583_v58  ;;  %v3126_v11 = vadd.f32 %v1615_v7, %v1584_v60 }
 0x24d   : > { %v3128_v19 = vadd.f32 %v1615_v7, %v1585_v61  ;;  %v3130_v29 = vadd.f32 %v1615_v7, %v1586_v62  ;;  %v3132_v37 = vadd.f32 %v1615_v7, %v1587_v31  ;;  %v3134_v47 = vadd.f32 %v1615_v7, %v1588_v2 }
 0x24e   : > { %v3136_v56 = vadd.f32 %v1615_v7, %v1589_v3  ;;  %v3138_v4 = vadd.f32 %v1615_v7, %v1590_v6  ;;  %v3140_v14 = vadd.f32 %v1615_v7, %v1591_v54  ;;  %v3142_v12 = vadd.f32 %v1615_v7, %v1592_v59 }
 0x24f   : > { %v3144_v13 = vadd.f32 %v1615_v7, %v1593_v0  ;;  %v3146_v17 = vadd.f32 %v1615_v7, %v1594_v5  ;;  %v3148_v18 = vadd.f32 %v1615_v7, %v1595_v10  ;;  %v3150_v21 = vadd.f32 %v1615_v7, %v1596_v15 }
 0x250   : > { %v3152_v22 = vadd.f32 %v1615_v7, %v1597_v20  ;;  %v3154_v23 = vadd.f32 %v1615_v7, %v1598_v25  ;;  %v3156_v26 = vadd.f32 %v1615_v7, %v1599_v30  ;;  %v3158_v27 = vadd.f32 %v1615_v7, %v1600_v36 }
 0x251   : > { %v3160_v28 = vadd.f32 %v1615_v7, %v1601_v43  ;;  %v3162_v33 = vadd.f32 %v1615_v7, %v1602_v49  ;;  %v3164_v34 = vadd.f32 %v1615_v7, %v1603_v57  ;;  %v3166_v35 = vadd.f32 %v1615_v7, %v1604_v63 }
 0x252   : > { %v3168_v38 = vadd.f32 %v1615_v7, %v1605_v8  ;;  %v3171_v39 = vadd.f32 %v1615_v7, %v1606_v16  ;;  %v3173_v41 = vadd.f32 %v1615_v7, %v1607_v24  ;;  %v3175_v42 = vadd.f32 %v1615_v7, %v1608_v32 }
 0x253   : > { %v3177_v44 = vadd.f32 %v1615_v7, %v1609_v40  ;;  %vm1647_vm2 = vcmp.gt.f32.partialorder %v3120_v9, 0.0  ;;  %vm1648_vm3 = vcmp.gt.f32.partialorder %v3122_v55, 0.0  ;;  %vm1649_vm4 = vcmp.gt.f32.partialorder %v3124_v1, 0.0 }
 0x254   : > { %vm1650_vm5 = vcmp.gt.f32.partialorder %v3126_v11, 0.0  ;;  %vm1651_vm6 = vcmp.gt.f32.partialorder %v3128_v19, 0.0  ;;  %vm1652_vm7 = vcmp.gt.f32.partialorder %v3130_v29, 0.0  ;;  %vm1653_vm8 = vcmp.gt.f32.partialorder %v3132_v37, 0.0 }
 0x255   : > { %vm1654_vm9 = vcmp.gt.f32.partialorder %v3134_v47, 0.0  ;;  %vm1655_vm10 = vcmp.gt.f32.partialorder %v3136_v56, 0.0  ;;  %v3196_v45 = vadd.f32 %v1615_v7, %v1610_v46  ;;  %v1677_v48 = vmul.f32 0.2, %v3120_v9 }
 0x256   : > { %v1678_v50 = vmul.f32 0.2, %v3122_v55  ;;  %v1679_v51 = vmul.f32 0.2, %v3124_v1  ;;  %vm1664_vm12 = vcmp.gt.f32.partialorder %v3154_v23, 0.0  ;;  %vm1665_vm11 = vcmp.gt.f32.partialorder %v3156_v26, 0.0 }
 0x257   : > { %v1680_v52 = vmul.f32 0.2, %v3126_v11  ;;  %v1681_v53 = vmul.f32 0.2, %v3128_v19  ;;  %v1682_v58 = vmul.f32 0.2, %v3130_v29  ;;  %v1707_v31 = vsel %vm1647_vm2, %v3120_v9, %v1677_v48 }
 0x258   : > { %vm1670_vm13 = vcmp.gt.f32.partialorder %v3166_v35, 0.0  ;;  %v1683_v60 = vmul.f32 0.2, %v3132_v37  ;;  %v1684_v61 = vmul.f32 0.2, %v3134_v47  ;;  %vm1671_vm1 = vcmp.gt.f32.partialorder %v3168_v38, 0.0  ;;  %1737 = vst [vmem:[%s3194_s12] sm:$0xff] %v1707_v31 }
 0x259   : > { %v1685_v62 = vmul.f32 0.2, %v3136_v56  ;;  %vm1673_vm0 = vcmp.gt.f32.partialorder %v3173_v41, 0.0  ;;  %vm1674_vm15 = vcmp.gt.f32.partialorder %v3175_v42, 0.0  ;;  %v1686_v2 = vmul.f32 0.2, %v3138_v4 }
 0x25a   : > { %v1687_v3 = vmul.f32 0.2, %v3140_v14  ;;  %v1688_v6 = vmul.f32 0.2, %v3142_v12  ;;  %v1708_v54 = vsel %vm1648_vm3, %v3122_v55, %v1678_v50  ;;  %vm1675_vm2 = vcmp.gt.f32.partialorder %v3177_v44, 0.0 }
 0x25b   : > { %vm1676_vm14 = vcmp.gt.f32.partialorder %v3196_v45, 0.0  ;;  %v1689_v59 = vmul.f32 0.2, %v3144_v13  ;;  %v1690_v0 = vmul.f32 0.2, %v3146_v17  ;;  %v1709_v10 = vsel %vm1649_vm4, %v3124_v1, %v1679_v51  ;;  %1738 = vst [vmem:[%s3194_s12 + $0x8] sm:$0xff] %v1708_v54 }
 0x25c   : > { %v1691_v5 = vmul.f32 0.2, %v3148_v18  ;;  %v1692_v7 = vmul.f32 0.2, %v3150_v21  ;;  %v1693_v15 = vmul.f32 0.2, %v3152_v22  ;;  %v1710_v25 = vsel %vm1650_vm5, %v3126_v11, %v1680_v52 }
 0x25d   : > { %v1694_v20 = vmul.f32 0.2, %v3154_v23  ;;  %1739 = vst [vmem:[%s3194_s12 + $0x10] sm:$0xff] %v1709_v10  ;;  %v1695_v30 = vmul.f32 0.2, %v3156_v26  ;;  %v1711_v49 = vsel %vm1651_vm6, %v3128_v19, %v1681_v53  ;;  %1740 = vst [vmem:[%s3194_s12 + $0x18] sm:$0xff] %v1710_v25  ;;  %v1712_v16 = vsel %vm1652_vm7, %v3130_v29, %v1682_v58 }
 0x25e   : > { %v1696_v36 = vmul.f32 0.2, %v3158_v27  ;;  %v1697_v43 = vmul.f32 0.2, %v3160_v28  ;;  %v1698_v57 = vmul.f32 0.2, %v3162_v33  ;;  %v1713_v46 = vsel %vm1653_vm8, %v3132_v37, %v1683_v60 }
 0x25f   : > { %v1699_v63 = vmul.f32 0.2, %v3164_v34  ;;  %v1700_v8 = vmul.f32 0.2, %v3166_v35  ;;  %1741 = vst [vmem:[%s3194_s12 + $0x20] sm:$0xff] %v1711_v49  ;;  %1742 = vst [vmem:[%s3194_s12 + $0x28] sm:$0xff] %v1712_v16  ;;  %v1714_v11 = vsel %vm1654_vm9, %v3134_v47, %v1684_v61  ;;  %v1715_v19 = vsel %vm1655_vm10, %v3136_v56, %v1685_v62 }
 0x260   : > { %v1701_v24 = vmul.f32 0.2, %v3168_v38  ;;  %v1702_v32 = vmul.f32 0.2, %v3171_v39  ;;  %v1703_v40 = vmul.f32 0.2, %v3173_v41 }
 0x261   : > { %v1704_v9 = vmul.f32 0.2, %v3175_v42  ;;  %v1705_v55 = vmul.f32 0.2, %v3177_v44  ;;  %v1706_v1 = vmul.f32 0.2, %v3196_v45 }
 0x262   : > { %1743 = vst [vmem:[%s3194_s12 + $0x30] sm:$0xff] %v1713_v46  ;;  %vm3380_vm3 = vcmp.gt.f32.partialorder %v3138_v4, 0.0  ;;  %vm3381_vm4 = vcmp.gt.f32.partialorder %v3140_v14, 0.0  ;;  %vm3382_vm5 = vcmp.gt.f32.partialorder %v3142_v12, 0.0  ;;  %1744 = vst [vmem:[%s3194_s12 + $0x38] sm:$0xff] %v1714_v11  ;;  %vm3383_vm6 = vcmp.gt.f32.partialorder %v3144_v13, 0.0 }
 0x263   : > { %v1716_v29 = vsel %vm3380_vm3, %v3138_v4, %v1686_v2  ;;  %v1717_v37 = vsel %vm3381_vm4, %v3140_v14, %v1687_v3  ;;  %v1718_v48 = vsel %vm3382_vm5, %v3142_v12, %v1688_v6  ;;  %v1719_v47 = vsel %vm3383_vm6, %v3144_v13, %v1689_v59  ;;  %1745 = vst [vmem:[%s3194_s12 + $0x40] sm:$0xff] %v1715_v19 }
 0x264   : > { %vm3384_vm7 = vcmp.gt.f32.partialorder %v3146_v17, 0.0  ;;  %vm3385_vm8 = vcmp.gt.f32.partialorder %v3148_v18, 0.0  ;;  %vm3386_vm9 = vcmp.gt.f32.partialorder %v3150_v21, 0.0  ;;  %1746 = vst [vmem:[%s3194_s12 + $0x48] sm:$0xff] %v1716_v29  ;;  %1747 = vst [vmem:[%s3194_s12 + $0x50] sm:$0xff] %v1717_v37  ;;  %vm3387_vm10 = vcmp.gt.f32.partialorder %v3152_v22, 0.0 }
 0x265   : > { %v1720_v56 = vsel %vm3384_vm7, %v3146_v17, %v1690_v0  ;;  %v1721_v4 = vsel %vm3385_vm8, %v3148_v18, %v1691_v5  ;;  %v1722_v14 = vsel %vm3386_vm9, %v3150_v21, %v1692_v7  ;;  %1748 = vst [vmem:[%s3194_s12 + $0x58] sm:$0xff] %v1718_v48  ;;  %v1723_v12 = vsel %vm3387_vm10, %v3152_v22, %v1693_v15 }
 0x266   : > { %v1724_v13 = vsel %vm1664_vm12, %v3154_v23, %v1694_v20  ;;  %v1725_v17 = vsel %vm1665_vm11, %v3156_v26, %v1695_v30  ;;  %vm3388_vm3 = vcmp.gt.f32.partialorder %v3158_v27, 0.0  ;;  %1749 = vst [vmem:[%s3194_s12 + $0x60] sm:$0xff] %v1719_v47  ;;  %1750 = vst [vmem:[%s3194_s12 + $0x68] sm:$0xff] %v1720_v56  ;;  %vm3389_vm4 = vcmp.gt.f32.partialorder %v3160_v28, 0.0 }
 0x267   : > { %v1726_v18 = vsel %vm3388_vm3, %v3158_v27, %v1696_v36  ;;  %1751 = vst [vmem:[%s3194_s12 + $0x70] sm:$0xff] %v1721_v4  ;;  %1752 = vst [vmem:[%s3194_s12 + $0x78] sm:$0xff] %v1722_v14  ;;  %v1727_v21 = vsel %vm3389_vm4, %v3160_v28, %v1697_v43  ;;  %vm3390_vm12 = vcmp.gt.f32.partialorder %v3162_v33, 0.0  ;;  %vm3391_vm11 = vcmp.gt.f32.partialorder %v3164_v34, 0.0 }
 0x268   : > { %v1728_v22 = vsel %vm3390_vm12, %v3162_v33, %v1698_v57  ;;  %v1729_v23 = vsel %vm3391_vm11, %v3164_v34, %v1699_v63  ;;  %v1730_v26 = vsel %vm1670_vm13, %v3166_v35, %v1700_v8  ;;  %1753 = vst [vmem:[%s3194_s12 + $0x80] sm:$0xff] %v1723_v12  ;;  %1754 = vst [vmem:[%s3194_s12 + $0x88] sm:$0xff] %v1724_v13  ;;  %vm3392_vm5 = vcmp.gt.f32.partialorder %v3171_v39, 0.0 }
 0x269   : > { %1755 = vst [vmem:[%s3194_s12 + $0x90] sm:$0xff] %v1725_v17  ;;  %1756 = vst [vmem:[%s3194_s12 + $0x98] sm:$0xff] %v1726_v18  ;;  %v1731_v27 = vsel %vm1671_vm1, %v3168_v38, %v1701_v24  ;;  %v1732_v28 = vsel %vm3392_vm5, %v3171_v39, %v1702_v32  ;;  %v1733_v33 = vsel %vm1673_vm0, %v3173_v41, %v1703_v40 }
 0x26a   : > { %v1734_v34 = vsel %vm1674_vm15, %v3175_v42, %v1704_v9  ;;  %1757 = vst [vmem:[%s3194_s12 + $0xa0] sm:$0xff] %v1727_v21  ;;  %1758 = vst [vmem:[%s3194_s12 + $0xa8] sm:$0xff] %v1728_v22  ;;  %v1735_v35 = vsel %vm1675_vm2, %v3177_v44, %v1705_v55  ;;  %v1736_v38 = vsel %vm1676_vm14, %v3196_v45, %v1706_v1 }
 0x26b   : > { %1759 = vst [vmem:[%s3194_s12 + $0xb0] sm:$0xff] %v1729_v23  ;;  %1760 = vst [vmem:[%s3194_s12 + $0xb8] sm:$0xff] %v1730_v26 }
 0x26c   : > { %1761 = vst [vmem:[%s3194_s12 + $0xc0] sm:$0xff] %v1731_v27  ;;  %1762 = vst [vmem:[%s3194_s12 + $0xc8] sm:$0xff] %v1732_v28 }
 0x26d   : > { %1763 = vst [vmem:[%s3194_s12 + $0xd0] sm:$0xff] %v1733_v33  ;;  %1764 = vst [vmem:[%s3194_s12 + $0xd8] sm:$0xff] %v1734_v34 }
 0x26e   : > { %1765 = vst [vmem:[%s3194_s12 + $0xe0] sm:$0xff] %v1735_v35  ;;  %1766 = vst [vmem:[%s3194_s12 + $0xe8] sm:$0xff] %v1736_v38 }
 0x26f PF: > { %s14_s17 = sadd.s32 1, %s2576_s17   ;;  %s3393_s15 = smov %s2572_s16 }
 0x270   : > { %p11_p5 = scmp.ge.s32.totalorder %s14_s17, 4   ;;  %s3394_s16 = smov %s3396_s18 }
 0x272   :  { %13 = sbr.rel (!%p11_p5) target bundleno = 2 (0x2), region = 78 }

</bundles_post_ra>
